<compile_context>
chip_gen: v7x
topology: tpu7x:2x2x1
jax: 0.10.0
libtpu: 0.0.40
codegen_flags: <defaults>
</compile_context>

<pallas_src>
import functools

import jax
import jax.numpy as jnp
import numpy as np
from jax.experimental import pallas as pl
from jax.experimental.pallas import tpu as pltpu


def _round_up(x, m):
    return ((x + m - 1) // m) * m


def _vmem_capacity_bytes():
    try:
        return int(pltpu.get_tpu_info().vmem_capacity_bytes)
    except Exception:
        return 64 << 20                      # conservative (v7x per-core VMEM)


# ----------------------------------------------------------------------------
# Direct path (stride == 1): shifted-window matmuls on a VMEM-resident image.
# ----------------------------------------------------------------------------
def _bconv_direct_kernel(x_ref, w_ref, b_ref, o_ref, *, k, tho, wo, kin,
                         wide, tiled_rows):
    """One (batch, output-row-tile) grid step.

    wide mode (k*k*Cin small -- width taps pre-packed into channels):
      x_ref: (rows, Wo, k*Cin) bf16, w_ref: (k, k*Cin, Cout_pad) bf16
    tap mode (large Cin -- padded NHWC image resident / slab):
      x_ref: (rows, Wp, Cin) bf16,   w_ref: (k*k, Cin, Cout_pad) bf16
    b_ref: (1, Cout_pad) f32 folded conv-bias + BN shift
    o_ref: (tho*Wo, Cout_pad) lane-dense output tile
    """
    row0 = pl.program_id(1) * tho if tiled_rows else 0

    acc = None
    if wide:
        for di in range(k):
            win = x_ref[pl.ds(row0 + di, tho), :, :]          # row shift only
            lhs = win.reshape(tho * wo, kin)
            c = jnp.dot(lhs, w_ref[di], preferred_element_type=jnp.float32)
            acc = c if acc is None else acc + c
    else:
        for dj in range(k):
            # Hoisted sublane-shifted width slice: done k times, not k*k.
            slab = x_ref[pl.ds(row0, tho + k - 1), dj:dj + wo, :]
            for di in range(k):
                lhs = slab[di:di + tho].reshape(tho * wo, kin)
                c = jnp.dot(lhs, w_ref[di * k + dj],
                            preferred_element_type=jnp.float32)
                acc = c if acc is None else acc + c

    y = acc + b_ref[...]                 # f32 epilogue (BN scale folded in w)
    o_ref[...] = (y * jax.nn.sigmoid(y)).astype(o_ref.dtype)     # SiLU


# ----------------------------------------------------------------------------
# Fallback path (stride != 1 / awkward shapes): im2col matmul.
# ----------------------------------------------------------------------------
def _bconv_im2col_kernel(p_ref, w_ref, b_ref, o_ref):
    acc = jnp.dot(p_ref[...], w_ref[...], preferred_element_type=jnp.float32)
    y = acc + b_ref[...]
    o_ref[...] = (y * jax.nn.sigmoid(y)).astype(o_ref.dtype)


def _bconv_nhwc(x_nhwc, conv_w, conv_b, bn_gamma, bn_beta, bn_mean, bn_var,
                *, k, s, eps=1e-5):
    """act(bn(conv(x))) for NHWC input; returns NHWC."""
    N, H, W, Cin = x_nhwc.shape
    Cout = conv_w.shape[0]
    p = k // 2
    Ho = (H + 2 * p - k) // s + 1
    Wo = (W + 2 * p - k) // s + 1
    Hp, Wp = H + 2 * p, W + 2 * p
    Cout_pad = _round_up(Cout, 128)                   # lane-dense output
    out_dtype = x_nhwc.dtype
    out_isz = int(np.dtype(out_dtype).itemsize)

    vmem_cap = _vmem_capacity_bytes()
    vmem_gate = min(int(0.70 * vmem_cap), 100 << 20)
    vmem_limit = min(int(0.80 * vmem_cap), 110 << 20)

    # Fold eval-mode BN into the conv: scale into weights, shift into bias.
    scale = (bn_gamma / jnp.sqrt(bn_var + eps)).astype(jnp.float32)
    bias = ((conv_b - bn_mean) * scale + bn_beta).astype(jnp.float32)
    w_perm = jnp.transpose(conv_w, (2, 3, 1, 0)).astype(jnp.float32)   # kh,kw,I,O
    w_perm = w_perm * scale[None, None, None, :]
    w_perm = jnp.pad(w_perm, ((0, 0), (0, 0), (0, 0), (0, Cout_pad - Cout)))
    bias_p = jnp.pad(bias, (0, Cout_pad - Cout)).reshape(1, Cout_pad)

    # Activations as bf16 once (halves DMA + resident VMEM); bf16 sublane tile.
    xp = jnp.pad(x_nhwc.astype(jnp.bfloat16), ((0, 0), (p, p), (p, p), (0, 0)))
    SUB = 16

    # ------------------------------------------------------------------
    # Direct path (stride 1).
    # ------------------------------------------------------------------
    if s == 1 and Wo % SUB == 0:
        wide = (k * k * Cin) <= 256        # pack width taps into channels
        kin = k * Cin if wide else Cin     # K of each in-kernel matmul
        Wx = Wo if wide else Wp
        Cx = kin

        row_cap = 2048 if vmem_cap >= (96 << 20) else 1024
        tho = max(1, min(Ho, row_cap // max(Wo, 1)))
        T = pl.cdiv(Ho, tho)
        Ho_pad = T * tho
        Hp_pad = Ho_pad + k - 1

        # VMEM budget (double-buffered blocks + f32 acc / lhs temporaries).
        w_rows = k if wide else k * k
        w_blk = w_rows * _round_up(kin, SUB) * Cout_pad * 2
        b_blk = 8 * Cout_pad * 4
        o_blk = tho * Wo * Cout_pad * out_isz
        temps = tho * Wo * (Cout_pad * 4 + _round_up(Cx, 128) * 2) + (2 << 20)

        def _est(rows):
            x_blk = rows * _round_up(Wx, SUB) * _round_up(Cx, 128) * 2
            return 2 * (x_blk + w_blk + b_blk + o_blk) + temps

        resident_ok = _est(Hp_pad) <= vmem_gate
        slab_ok = _est(tho + k - 1) <= vmem_gate and T <= 1024

        if resident_ok or slab_ok:
            xpad = jnp.pad(xp, ((0, 0), (0, Hp_pad - Hp), (0, 0), (0, 0)))
            if wide:
                # Pre-shift the kw taps into channels: (N, Hp_pad, Wo, k*Cin).
                if k > 1:
                    x_img = jnp.concatenate(
                        [xpad[:, :, dj:dj + Wo, :] for dj in range(k)], axis=-1)
                else:
                    x_img = xpad[:, :, :Wo, :]
                w_mat = w_perm.reshape(k, k * Cin, Cout_pad)
            else:
                x_img = xpad
                w_mat = w_perm.reshape(k * k, Cin, Cout_pad)
            w_mat = w_mat.astype(jnp.bfloat16)

            if resident_ok:
                x5 = x_img[:, None]                       # (N,1,Hp_pad,Wx,Cx)
                rows = Hp_pad
                x_index = lambda n, t: (n, 0, 0, 0, 0)
                tiled_rows = True
            else:
                # Slab-tiled x: only (tho+k-1) rows resident per grid step.
                x5 = jnp.stack(
                    [x_img[:, i * tho:i * tho + tho + k - 1] for i in range(T)],
                    axis=1)                               # (N,T,rows,Wx,Cx)
                rows = tho + k - 1
                x_index = lambda n, t: (n, t, 0, 0, 0)
                tiled_rows = False

            kernel = functools.partial(
                _bconv_direct_kernel, k=k, tho=tho, wo=Wo, kin=kin,
                wide=wide, tiled_rows=tiled_rows)

            cost = pl.CostEstimate(
                flops=2 * N * Ho_pad * Wo * (k * k * Cin) * Cout_pad,
                transcendentals=N * Ho_pad * Wo * Cout_pad,
                bytes_accessed=int(x5.size * 2 + w_mat.size * 2
                                   + bias_p.size * 4
                                   + N * Ho_pad * Wo * Cout_pad * out_isz))

            out = pl.pallas_call(
                kernel,
                out_shape=jax.ShapeDtypeStruct((N, Ho_pad * Wo, Cout_pad),
                                               out_dtype),
                grid_spec=pltpu.PrefetchScalarGridSpec(
                    num_scalar_prefetch=0,
                    grid=(N, T),
                    in_specs=[
                        pl.BlockSpec((None, None, rows, Wx, Cx), x_index),
                        pl.BlockSpec(w_mat.shape, lambda n, t: (0, 0, 0)),
                        pl.BlockSpec((1, Cout_pad), lambda n, t: (0, 0)),
                    ],
                    out_specs=pl.BlockSpec((None, tho * Wo, Cout_pad),
                                           lambda n, t: (n, t, 0)),
                ),
                compiler_params=pltpu.CompilerParams(
                    dimension_semantics=("parallel", "parallel"),
                    vmem_limit_bytes=vmem_limit),
                cost_estimate=cost,
            )(x5, w_mat, bias_p)

            out = out[:, :, :Cout].reshape(N, Ho_pad, Wo, Cout)[:, :Ho]
            return out                                    # NHWC

    # ------------------------------------------------------------------
    # Fallback: stride != 1, awkward widths, or VMEM-bound shapes.
    # TODO(synk): add a strided-window direct path for s == 2 to avoid the
    # k^2 HBM blow-up of im2col for the common downsampling Bconv.
    # ------------------------------------------------------------------
    cols = []
    for di in range(k):
        for dj in range(k):
            cols.append(xp[:, di:di + s * Ho:s, dj:dj + s * Wo:s, :])
    patches = jnp.stack(cols, axis=-2).reshape(N * Ho * Wo, k * k * Cin)
    w_mat = w_perm.reshape(k * k * Cin, Cout_pad).astype(jnp.bfloat16)

    M, K = N * Ho * Wo, k * k * Cin
    TN = Cout_pad if Cout_pad <= 256 else (256 if Cout_pad % 256 == 0 else 128)
    TM = 1024 if vmem_cap >= (96 << 20) else 512
    while TM > 128:
        need = (2 * (TM * K * 2 + K * TN * 2 + TM * TN * out_isz)
                + TM * TN * 4 + (2 << 20))
        if need <= vmem_gate:
            break
        TM //= 2
    if M < TM:
        TM = _round_up(M, SUB)
    M_pad = _round_up(M, TM)
    if M_pad != M:
        patches = jnp.pad(patches, ((0, M_pad - M), (0, 0)))

    cost = pl.CostEstimate(
        flops=2 * M_pad * K * Cout_pad,
        transcendentals=M_pad * Cout_pad,
        bytes_accessed=int(M_pad * K * 2 + K * Cout_pad * 2
                           + M_pad * Cout_pad * out_isz))

    out_flat = pl.pallas_call(
        _bconv_im2col_kernel,
        out_shape=jax.ShapeDtypeStruct((M_pad, Cout_pad), out_dtype),
        grid_spec=pltpu.PrefetchScalarGridSpec(
            num_scalar_prefetch=0,
            grid=(M_pad // TM, Cout_pad // TN),
            in_specs=[
                pl.BlockSpec((TM, K), lambda i, j: (i, 0)),
                pl.BlockSpec((K, TN), lambda i, j: (0, j)),
                pl.BlockSpec((1, TN), lambda i, j: (0, j)),
            ],
            out_specs=pl.BlockSpec((TM, TN), lambda i, j: (i, j)),
        ),
        compiler_params=pltpu.CompilerParams(
            dimension_semantics=("parallel", "parallel"),
            vmem_limit_bytes=vmem_limit),
        cost_estimate=cost,
    )(patches, w_mat, bias_p)

    out = out_flat[:M, :Cout].reshape(N, Ho, Wo, Cout)
    return out                                            # NHWC


# NHWC-native entry point (avoids layout round trips for channels-last users).
bconv_forward_nhwc = jax.jit(_bconv_nhwc, static_argnames=("k", "s"))


@functools.partial(jax.jit, static_argnames=("k", "s"))
def bconv_forward(x_nchw, conv_w, conv_b, bn_gamma, bn_beta, bn_mean, bn_var,
                  *, k, s, eps=1e-5):
    """Equivalent of PyTorch Bconv.forward (NCHW in / NCHW out, eval-mode BN)."""
    x_nhwc = jnp.transpose(x_nchw, (0, 2, 3, 1))
    y = _bconv_nhwc(x_nhwc, conv_w, conv_b, bn_gamma, bn_beta, bn_mean, bn_var,
                    k=k, s=s, eps=eps)
    return jnp.transpose(y, (0, 3, 1, 2))


def _reference(x_nchw, conv_w, conv_b, bn_gamma, bn_beta, bn_mean, bn_var,
               k, s, eps=1e-5):
    """Pure-JAX reference (lax.conv) for the correctness check."""
    p = k // 2
    y = jax.lax.conv_general_dilated(
        x_nchw, conv_w, window_strides=(s, s), padding=((p, p), (p, p)),
        dimension_numbers=("NCHW", "OIHW", "NCHW"))
    y = y + conv_b.reshape(1, -1, 1, 1)
    y = (y - bn_mean.reshape(1, -1, 1, 1)) / jnp.sqrt(
        bn_var.reshape(1, -1, 1, 1) + eps)
    y = y * bn_gamma.reshape(1, -1, 1, 1) + bn_beta.reshape(1, -1, 1, 1)
    return y * jax.nn.sigmoid(y)


if __name__ == "__main__":
    # Bconv(ch_in=4, ch_out=8, k=3) at small shapes; s=1 (direct) and s=2
    # (im2col fallback, the common downsampling configuration).
    N, Cin, H, W = 2, 4, 16, 16
    Cout, k = 8, 3

    key = jax.random.PRNGKey(0)
    kx, kw, kb, kg, kbeta, km, kv = jax.random.split(key, 7)

    x = jax.random.normal(kx, (N, Cin, H, W), dtype=jnp.float32)
    conv_w = jax.random.normal(kw, (Cout, Cin, k, k), dtype=jnp.float32) * 0.1
    conv_b = jax.random.normal(kb, (Cout,), dtype=jnp.float32) * 0.1
    bn_gamma = 1.0 + 0.1 * jax.random.normal(kg, (Cout,), dtype=jnp.float32)
    bn_beta = 0.1 * jax.random.normal(kbeta, (Cout,), dtype=jnp.float32)
    bn_mean = 0.1 * jax.random.normal(km, (Cout,), dtype=jnp.float32)
    bn_var = jnp.abs(1.0 + 0.1 * jax.random.normal(kv, (Cout,),
                                                   dtype=jnp.float32))

    for s in (1, 2):
        out = bconv_forward(x, conv_w, conv_b, bn_gamma, bn_beta, bn_mean,
                            bn_var, k=k, s=s)
        out = jax.block_until_ready(out)
        ref = _reference(x, conv_w, conv_b, bn_gamma, bn_beta, bn_mean,
                         bn_var, k, s)
        # bf16 matmul operands (f32 accumulation) vs f32 reference.
        np.testing.assert_allclose(np.asarray(out), np.asarray(ref),
                                   rtol=2e-2, atol=2e-2)
        Ho = (H + 2 * (k // 2) - k) // s + 1
        assert out.shape == (N, Cout, Ho, Ho)

    print("KERNEL_OK")
</pallas_src>

<mosaic_0001>
module attributes {stable_mosaic.version = 11 : i64} {
  func.func @_bconv_direct_kernel(%arg0: i32, %arg1: i32, %arg2: memref<1x1x18x16x12xbf16, #tpu.memory_space<vmem>>, %arg3: memref<3x12x128xbf16, #tpu.memory_space<vmem>>, %arg4: memref<1x128xf32, #tpu.memory_space<vmem>>, %arg5: memref<1x256x128xf32, #tpu.memory_space<vmem>>) attributes {dimension_semantics = [#tpu.dimension_semantics<parallel>, #tpu.dimension_semantics<parallel>], iteration_bounds = array<i64: 2, 1>, scalar_prefetch = 0 : i64, scratch_operands = 0 : i64, tpu.core_type = #tpu.core_type<tc>, window_params = [{transform_indices = @transform_0, window_bounds = array<i64: 1, 1, 18, 16, 12>}, {pipeline_mode = #tpu.pipeline_mode<synchronous>, transform_indices = @transform_1, window_bounds = array<i64: 3, 12, 128>}, {pipeline_mode = #tpu.pipeline_mode<synchronous>, transform_indices = @transform_2, window_bounds = array<i64: 1, 128>}, {transform_indices = @transform_3, window_bounds = array<i64: 1, 256, 128>}]} {
    %c16_i32 = arith.constant 16 : i32
    %0 = arith.muli %arg1, %c16_i32 : i32
    %c0_i32 = arith.constant 0 : i32
    %1 = arith.addi %0, %c0_i32 : i32
    %c0 = arith.constant 0 : index
    %c0_0 = arith.constant 0 : index
    %2 = arith.index_cast %1 : i32 to index
    %c0_1 = arith.constant 0 : index
    %c0_2 = arith.constant 0 : index
    %3 = vector.load %arg2[%c0, %c0_0, %2, %c0_1, %c0_2] : memref<1x1x18x16x12xbf16, #tpu.memory_space<vmem>>, vector<1x1x16x16x12xbf16>
    %4 = vector.shape_cast %3 : vector<1x1x16x16x12xbf16> to vector<16x16x12xbf16>
    %5 = vector.shape_cast %4 : vector<16x16x12xbf16> to vector<256x12xbf16>
    %c0_3 = arith.constant 0 : index
    %c0_4 = arith.constant 0 : index
    %c0_5 = arith.constant 0 : index
    %6 = vector.load %arg3[%c0_3, %c0_4, %c0_5] : memref<3x12x128xbf16, #tpu.memory_space<vmem>>, vector<1x12x128xbf16>
    %7 = vector.shape_cast %6 : vector<1x12x128xbf16> to vector<12x128xbf16>
    %cst = arith.constant dense<0.000000e+00> : vector<256x128xf32>
    %8 = tpu.matmul %5, %7, %cst {dimension_numbers = #tpu.dot_dimension_numbers<[1], [0], [0], [1], [0, 0, 1, 1], [], []>} : vector<256x12xbf16>, vector<12x128xbf16>, vector<256x128xf32> -> vector<256x128xf32>
    %c1_i32 = arith.constant 1 : i32
    %9 = arith.addi %0, %c1_i32 : i32
    %c0_6 = arith.constant 0 : index
    %c0_7 = arith.constant 0 : index
    %10 = arith.index_cast %9 : i32 to index
    %c0_8 = arith.constant 0 : index
    %c0_9 = arith.constant 0 : index
    %11 = vector.load %arg2[%c0_6, %c0_7, %10, %c0_8, %c0_9] : memref<1x1x18x16x12xbf16, #tpu.memory_space<vmem>>, vector<1x1x16x16x12xbf16>
    %12 = vector.shape_cast %11 : vector<1x1x16x16x12xbf16> to vector<16x16x12xbf16>
    %13 = vector.shape_cast %12 : vector<16x16x12xbf16> to vector<256x12xbf16>
    %c1 = arith.constant 1 : index
    %c0_10 = arith.constant 0 : index
    %c0_11 = arith.constant 0 : index
    %14 = vector.load %arg3[%c1, %c0_10, %c0_11] : memref<3x12x128xbf16, #tpu.memory_space<vmem>>, vector<1x12x128xbf16>
    %15 = vector.shape_cast %14 : vector<1x12x128xbf16> to vector<12x128xbf16>
    %cst_12 = arith.constant dense<0.000000e+00> : vector<256x128xf32>
    %16 = tpu.matmul %13, %15, %cst_12 {dimension_numbers = #tpu.dot_dimension_numbers<[1], [0], [0], [1], [0, 0, 1, 1], [], []>} : vector<256x12xbf16>, vector<12x128xbf16>, vector<256x128xf32> -> vector<256x128xf32>
    %17 = arith.addf %8, %16 : vector<256x128xf32>
    %c2_i32 = arith.constant 2 : i32
    %18 = arith.addi %0, %c2_i32 : i32
    %c0_13 = arith.constant 0 : index
    %c0_14 = arith.constant 0 : index
    %19 = arith.index_cast %18 : i32 to index
    %c0_15 = arith.constant 0 : index
    %c0_16 = arith.constant 0 : index
    %20 = vector.load %arg2[%c0_13, %c0_14, %19, %c0_15, %c0_16] : memref<1x1x18x16x12xbf16, #tpu.memory_space<vmem>>, vector<1x1x16x16x12xbf16>
    %21 = vector.shape_cast %20 : vector<1x1x16x16x12xbf16> to vector<16x16x12xbf16>
    %22 = vector.shape_cast %21 : vector<16x16x12xbf16> to vector<256x12xbf16>
    %c2 = arith.constant 2 : index
    %c0_17 = arith.constant 0 : index
    %c0_18 = arith.constant 0 : index
    %23 = vector.load %arg3[%c2, %c0_17, %c0_18] : memref<3x12x128xbf16, #tpu.memory_space<vmem>>, vector<1x12x128xbf16>
    %24 = vector.shape_cast %23 : vector<1x12x128xbf16> to vector<12x128xbf16>
    %cst_19 = arith.constant dense<0.000000e+00> : vector<256x128xf32>
    %25 = tpu.matmul %22, %24, %cst_19 {dimension_numbers = #tpu.dot_dimension_numbers<[1], [0], [0], [1], [0, 0, 1, 1], [], []>} : vector<256x12xbf16>, vector<12x128xbf16>, vector<256x128xf32> -> vector<256x128xf32>
    %26 = arith.addf %17, %25 : vector<256x128xf32>
    %c0_20 = arith.constant 0 : index
    %c0_21 = arith.constant 0 : index
    %27 = vector.load %arg4[%c0_20, %c0_21] : memref<1x128xf32, #tpu.memory_space<vmem>>, vector<1x128xf32>
    %28 = vector.broadcast %27 : vector<1x128xf32> to vector<256x128xf32>
    %29 = arith.addf %26, %28 : vector<256x128xf32>
    %30 = arith.negf %29 : vector<256x128xf32>
    %31 = math.exp %30 : vector<256x128xf32>
    %cst_22 = arith.constant 1.000000e+00 : f32
    %32 = vector.broadcast %cst_22 : f32 to vector<256x128xf32>
    %33 = arith.addf %32, %31 : vector<256x128xf32>
    %34 = arith.divf %32, %33 : vector<256x128xf32>
    %35 = arith.mulf %29, %34 : vector<256x128xf32>
    %c0_23 = arith.constant 0 : index
    %c0_24 = arith.constant 0 : index
    %c0_25 = arith.constant 0 : index
    %36 = vector.load %arg5[%c0_23, %c0_24, %c0_25] : memref<1x256x128xf32, #tpu.memory_space<vmem>>, vector<1x256x128xf32>
    %37 = vector.shape_cast %36 : vector<1x256x128xf32> to vector<256x128xf32>
    %38 = vector.shape_cast %35 : vector<256x128xf32> to vector<1x256x128xf32>
    tpu.vector_store %arg5[%c0_23, %c0_24, %c0_25], %38 {strides = array<i32>} : memref<1x256x128xf32, #tpu.memory_space<vmem>>, vector<1x256x128xf32>,
    return
  }
  func.func @transform_0(%arg0: i32, %arg1: i32) -> (i32, i32, i32, i32, i32) {
    %c0_i32 = arith.constant 0 : i32
    %c0_i32_0 = arith.constant 0 : i32
    %c0_i32_1 = arith.constant 0 : i32
    %c0_i32_2 = arith.constant 0 : i32
    %c0_i32_3 = arith.constant 0 : i32
    return %arg0, %c0_i32, %c0_i32_0, %c0_i32_1, %c0_i32_2 : i32, i32, i32, i32, i32
  }
  func.func @transform_1(%arg0: i32, %arg1: i32) -> (i32, i32, i32) {
    %c0_i32 = arith.constant 0 : i32
    %c0_i32_0 = arith.constant 0 : i32
    %c0_i32_1 = arith.constant 0 : i32
    %c0_i32_2 = arith.constant 0 : i32
    return %c0_i32, %c0_i32_0, %c0_i32_1 : i32, i32, i32
  }
  func.func @transform_2(%arg0: i32, %arg1: i32) -> (i32, i32) {
    %c0_i32 = arith.constant 0 : i32
    %c0_i32_0 = arith.constant 0 : i32
    %c0_i32_1 = arith.constant 0 : i32
    return %c0_i32, %c0_i32_0 : i32, i32
  }
  func.func @transform_3(%arg0: i32, %arg1: i32) -> (i32, i32, i32) {
    %c0_i32 = arith.constant 0 : i32
    %c0_i32_0 = arith.constant 0 : i32
    return %arg0, %arg1, %c0_i32 : i32, i32, i32
  }
}

</mosaic_0001>

<bundles_post_ra>
// kernel: bconv_forward.1
= control target key start
LH: loop header
LB: loop body
LE: loop exit
PB: predicated region body
PF: predicated region fallthrough
CT: control target
= control target key end

     0   :  { %s2304_s12 = smov 0   ;;  %s2306_s13 = smov 0   ;;  %s2669_s0 = inlined_call_operand.vmem [shape: bf16[2,1,18,16,12], index: 0, kind: input, shape index: {}]   ;;  %s2670_s1 = inlined_call_operand.vmem [shape: bf16[3,12,128], index: 1, kind: input, shape index: {}]   ;;  %s2671_s2 = inlined_call_operand.vmem [shape: f32[1,128], index: 2, kind: input, shape index: {}]   ;;  %s2672_s3 = inlined_call_operand.vmem [shape: f32[2,256,128], index: 3, kind: output, shape index: {}]  }
   0x1   :  { %s2308_s14 = smov 0  }
   0x2 LB: > { %s25_s15 = sadd.s32 1, %s2278_s13  ;;  %p1626_p0 = scmp.ge.s32.totalorder %s2282_s14, 1  ;;  %s2282_s14 = sphi %s2308_s14, %s13_s14   ;;  %s2278_s13 = sphi %s2306_s13, %s2674_s13   ;;  %s2274_s12 = sphi %s2304_s12, %s2673_s12  }
   0x3   : > { %p27_p1 = scmp.ge.s32.totalorder %s25_s15, 2  ;;  %p151_p2 = scmp.lt.s32.totalorder %s2282_s14, 3 }
   0x5   : > { %s2676_s15 = smov (%p27_p1, %s25_s15), 0  ;;  %p152_p3 = pnand %p1626_p0, %p151_p2 }
   0x6   : > { %v2081_v0 = vld [vmem:[%s2670_s1 + $0x8] sm:$0x3f] (!%p152_p3)   ;;  %vm406_vm0 = vcmask (!%p152_p3), 1045504   ;;  %p179_p4 = scmp.lt.s32.totalorder (!%p152_p3), %s2274_s12, 1  ;;  %v2082_v1 = vld [vmem:[%s2670_s1] sm:$0x3f] (!%p152_p3)  }
   0x7   : > { %155 = sbr.rel (%p152_p3) target bundleno = 362 (0x16a), region = 32  ;;  %2052 = vmatprep.subr.msk.bf16.mxu1 (!%p152_p3), %vm406_vm0, %v2081_v0  ;;  %v408_v2 = vsel (!%p152_p3), %vm406_vm0, %v2081_v0, 0  ;;  %v2085_v3 = vld [vmem:[%s2670_s1 + $0x10] sm:$0x3f] (!%p152_p3)   ;;  %2053 = vmatprep.subr.msk.bf16.mxu0 (!%p152_p3), %vm406_vm0, %v2082_v1  ;;  %v705_v4 = vsel (!%p152_p3), %vm406_vm0, %v2082_v1, 0  ;;  %vm357_vm1 = vcmask (!%p152_p3), 97280  }
   0x8   : > { %1885 = vmatpush3.bf16.msra.mxu1 (!%p152_p3), %v408_v2  ;;  %1919 = vmatpush3.bf16.msra.mxu0 (!%p152_p3), %v705_v4  ;;  %v1041_v9 = vsel (!%p152_p3), %vm406_vm0, %v2085_v3, 0 }
   0x9   : > { %2054 = vmatprep.subr.msk.bf16.mxu1 (!%p152_p3), %vm406_vm0, %v2082_v1  ;;  %2055 = vmatprep.subr.msk.bf16.mxu0 (!%p152_p3), %vm406_vm0, %v2085_v3 }
   0xe   : > { %s2678_s12 = smov (!%p179_p4, %s2274_s12), 1 }
   0xf   : > { %s2056_s22 = smul.u32 144, %s2678_s12  ;;  %s1832_s28 = sshll.u32 %s2678_s12, 8 }
  0x10   : > { %s2524_s4 = scalar_lea.vmem %s2672_s3, %s1832_s28 }
  0x11   : > { %s2343_s25 = scalar_lea.vmem %s2669_s0, %s2056_s22 }
  0x12   : > { %v2083_v5 = vld [vmem:[%s2343_s25 + $0x8] sm:$0xff]   ;;  %v2084_v6 = vld [vmem:[%s2343_s25] sm:$0xff]   ;;  %v2086_v7 = vld [vmem:[%s2343_s25 + $0x10] sm:$0xff]  }
  0x13   : > { %1886 = vmatprep.mubr.msk.bf16.mxu1 %vm357_vm1, %v2083_v5  ;;  %1920 = vmatprep.mubr.msk.bf16.mxu0 %vm357_vm1, %v2084_v6  ;;  %v2087_v8 = vld [vmem:[%s2343_s25 + $0x8] sm:$0xff]   ;;  %v2088_v10 = vld [vmem:[%s2343_s25 + $0x18] sm:$0xff]   ;;  %v2089_v11 = vld [vmem:[%s2343_s25 + $0x10] sm:$0xff]  }
  0x14   : > { %1887 = vmatmul.mubr.msk.bf16.vlgmr.msra.gmra.mrb[0].mxu1 %vm357_vm1, %v2086_v7  ;;  %1921 = vmatmul.mubr.msk.bf16.vlgmr.msra.gmra.mrb[0].mxu0 %vm357_vm1, %v2087_v8  ;;  %v2090_v12 = vld [vmem:[%s2343_s25 + $0x20] sm:$0xff]   ;;  %v2091_v13 = vld [vmem:[%s2343_s25 + $0x18] sm:$0xff]   ;;  %v2092_v14 = vld [vmem:[%s2343_s25 + $0x28] sm:$0xff]  }
  0x15   : > { %1987 = vmatpush3.bf16.msra.mxu1 %v705_v4  ;;  %1953 = vmatpush3.bf16.msra.mxu0 %v1041_v9  ;;  %v2093_v15 = vld [vmem:[%s2343_s25 + $0x20] sm:$0xff]   ;;  %v2094_v16 = vld [vmem:[%s2343_s25 + $0x30] sm:$0xff]   ;;  %v2095_v17 = vld [vmem:[%s2343_s25 + $0x28] sm:$0xff]  }
  0x16   : > { %1890 = vmatprep.mubr.msk.bf16.mxu1 %vm357_vm1, %v2088_v10  ;;  %1924 = vmatprep.mubr.msk.bf16.mxu0 %vm357_vm1, %v2089_v11  ;;  %v2096_v18 = vld [vmem:[%s2343_s25 + $0x38] sm:$0xff]   ;;  %v2097_v19 = vld [vmem:[%s2343_s25 + $0x30] sm:$0xff]   ;;  %v2098_v20 = vld [vmem:[%s2343_s25 + $0x40] sm:$0xff]  }
  0x17   : > { %v2099_v21 = vld [vmem:[%s2343_s25 + $0x38] sm:$0xff]   ;;  %v2100_v22 = vld [vmem:[%s2343_s25 + $0x48] sm:$0xff]   ;;  %v2101_v23 = vld [vmem:[%s2343_s25 + $0x10] sm:$0xff]  }
  0x18   : > { %v2102_v24 = vld [vmem:[%s2343_s25 + $0x50] sm:$0xff]   ;;  %v2103_v25 = vld [vmem:[%s2343_s25 + $0x18] sm:$0xff]   ;;  %v2105_v27 = vld [vmem:[%s2343_s25 + $0x20] sm:$0xff]  }
  0x19   : > { %v2104_v26 = vld [vmem:[%s2343_s25 + $0x58] sm:$0xff]   ;;  %v2106_v28 = vld [vmem:[%s2343_s25 + $0x60] sm:$0xff]   ;;  %v2107_v29 = vld [vmem:[%s2343_s25 + $0x28] sm:$0xff]  }
  0x1a   : > { %v2108_v30 = vld [vmem:[%s2343_s25 + $0x68] sm:$0xff]   ;;  %v2109_v31 = vld [vmem:[%s2343_s25 + $0x30] sm:$0xff]   ;;  %v2111_v33 = vld [vmem:[%s2343_s25 + $0x38] sm:$0xff]  }
  0x1b   : > { %v2110_v32 = vld [vmem:[%s2343_s25 + $0x70] sm:$0xff]   ;;  %v2112_v34 = vld [vmem:[%s2343_s25 + $0x78] sm:$0xff]   ;;  %v2113_v35 = vld [vmem:[%s2343_s25 + $0x40] sm:$0xff]  }
  0x1c   : > { %1891 = vmatmul.mubr.msk.bf16.gmra.mrb[4].mxu1 %vm357_vm1, %v2090_v12  ;;  %1925 = vmatmul.mubr.msk.bf16.gmra.mrb[4].mxu0 %vm357_vm1, %v2091_v13  ;;  %v2114_v36 = vld [vmem:[%s2343_s25 + $0x80] sm:$0xff]   ;;  %v2115_v37 = vld [vmem:[%s2343_s25 + $0x48] sm:$0xff]   ;;  %v2117_v39 = vld [vmem:[%s2343_s25 + $0x50] sm:$0xff]  }
  0x1d   : > { %1894 = vmatprep.mubr.msk.bf16.mxu1 %vm357_vm1, %v2092_v14  ;;  %1928 = vmatprep.mubr.msk.bf16.mxu0 %vm357_vm1, %v2093_v15  ;;  %v2116_v38 = vld [vmem:[%s2343_s25 + $0x40] sm:$0xff]   ;;  %v2118_v40 = vld [vmem:[%s2343_s25 + $0x48] sm:$0xff]   ;;  %v2119_v41 = vld [vmem:[%s2343_s25 + $0x58] sm:$0xff]  }
  0x1e   : > { %v2120_v42 = vld [vmem:[%s2343_s25 + $0x50] sm:$0xff]   ;;  %v2121_v43 = vld [vmem:[%s2343_s25 + $0x60] sm:$0xff]   ;;  %v2122_v44 = vld [vmem:[%s2343_s25 + $0x58] sm:$0xff]  }
  0x1f   : > { %v2123_v45 = vld [vmem:[%s2343_s25 + $0x68] sm:$0xff]   ;;  %v2124_v46 = vld [vmem:[%s2343_s25 + $0x60] sm:$0xff]   ;;  %v2125_v47 = vld [vmem:[%s2343_s25 + $0x70] sm:$0xff]  }
  0x20   : > { %v2126_v48 = vld [vmem:[%s2343_s25 + $0x68] sm:$0xff]   ;;  %v2127_v49 = vld [vmem:[%s2343_s25 + $0x78] sm:$0xff]   ;;  %v2128_v50 = vld [vmem:[%s2343_s25 + $0x70] sm:$0xff]  }
  0x21   : > { %v2129_v51 = vld [vmem:[%s2343_s25 + $0x80] sm:$0xff]   ;;  %v2130_v52 = vld [vmem:[%s2343_s25 + $0x78] sm:$0xff]   ;;  %v2131_v53 = vld [vmem:[%s2343_s25 + $0x88] sm:$0xff]  }
  0x22   : > { %v2455_v7 = vld [vmem:[%s2671_s2] ss:$0 sm:$0xff] }
  0x24   : > { %1895 = vmatmul.mubr.msk.bf16.gmra.mrb[8].mxu1 %vm357_vm1, %v2094_v16  ;;  %1929 = vmatmul.mubr.msk.bf16.gmra.mrb[8].mxu0 %vm357_vm1, %v2095_v17 }
  0x25   : > { %1898 = vmatprep.mubr.msk.bf16.mxu1 %vm357_vm1, %v2096_v18  ;;  %1932 = vmatprep.mubr.msk.bf16.mxu0 %vm357_vm1, %v2097_v19 }
  0x2c   : > { %1899 = vmatmul.mubr.msk.bf16.gmra.mrb[12].mxu1 %vm357_vm1, %v2098_v20  ;;  %1933 = vmatmul.mubr.msk.bf16.gmra.mrb[12].mxu0 %vm357_vm1, %v2099_v21 }
  0x2d   : > { %1902 = vmatprep.mubr.msk.bf16.mxu1 %vm357_vm1, %v2100_v22  ;;  %1954 = vmatprep.mubr.msk.bf16.mxu0 %vm357_vm1, %v2101_v23 }
  0x34   : > { %1903 = vmatmul.mubr.msk.bf16.gmra.mrb[16].mxu1 %vm357_vm1, %v2102_v24  ;;  %1955 = vmatmul.mubr.msk.bf16.vlgmr.msra.gmra.mrb[0].mxu0 %vm357_vm1, %v2103_v25 }
  0x35   : > { %1906 = vmatprep.mubr.msk.bf16.mxu1 %vm357_vm1, %v2104_v26  ;;  %1958 = vmatprep.mubr.msk.bf16.mxu0 %vm357_vm1, %v2105_v27 }
  0x3c   : > { %1907 = vmatmul.mubr.msk.bf16.gmra.mrb[20].mxu1 %vm357_vm1, %v2106_v28  ;;  %1959 = vmatmul.mubr.msk.bf16.gmra.mrb[4].mxu0 %vm357_vm1, %v2107_v29 }
  0x3d   : > { %1910 = vmatprep.mubr.msk.bf16.mxu1 %vm357_vm1, %v2108_v30  ;;  %1962 = vmatprep.mubr.msk.bf16.mxu0 %vm357_vm1, %v2109_v31 }
  0x44   : > { %1911 = vmatmul.mubr.msk.bf16.gmra.mrb[24].mxu1 %vm357_vm1, %v2110_v32  ;;  %1963 = vmatmul.mubr.msk.bf16.gmra.mrb[8].mxu0 %vm357_vm1, %v2111_v33 }
  0x45   : > { %1914 = vmatprep.mubr.msk.bf16.mxu1 %vm357_vm1, %v2112_v34  ;;  %1966 = vmatprep.mubr.msk.bf16.mxu0 %vm357_vm1, %v2113_v35 }
  0x4c   : > { %1915 = vmatmul.mubr.msk.bf16.gmra.mrb[28].mxu1 %vm357_vm1, %v2114_v36  ;;  %1967 = vmatmul.mubr.msk.bf16.gmra.mrb[12].mxu0 %vm357_vm1, %v2115_v37 }
  0x4d   : > { %1936 = vmatprep.mubr.msk.bf16.mxu1 %vm357_vm1, %v2116_v38  ;;  %1970 = vmatprep.mubr.msk.bf16.mxu0 %vm357_vm1, %v2117_v39 }
  0x54   : > { %1937 = vmatmul.mubr.msk.bf16.vlgmr.msra.gmra.mrb[16].mxu1 %vm357_vm1, %v2118_v40  ;;  %1971 = vmatmul.mubr.msk.bf16.gmra.mrb[16].mxu0 %vm357_vm1, %v2119_v41 }
  0x55   : > { %1940 = vmatprep.mubr.msk.bf16.mxu1 %vm357_vm1, %v2120_v42  ;;  %1974 = vmatprep.mubr.msk.bf16.mxu0 %vm357_vm1, %v2121_v43 }
  0x5c   : > { %1941 = vmatmul.mubr.msk.bf16.gmra.mrb[20].mxu1 %vm357_vm1, %v2122_v44  ;;  %1975 = vmatmul.mubr.msk.bf16.gmra.mrb[20].mxu0 %vm357_vm1, %v2123_v45 }
  0x5d   : > { %1944 = vmatprep.mubr.msk.bf16.mxu1 %vm357_vm1, %v2124_v46  ;;  %1978 = vmatprep.mubr.msk.bf16.mxu0 %vm357_vm1, %v2125_v47 }
  0x64   : > { %1945 = vmatmul.mubr.msk.bf16.gmra.mrb[24].mxu1 %vm357_vm1, %v2126_v48  ;;  %1979 = vmatmul.mubr.msk.bf16.gmra.mrb[24].mxu0 %vm357_vm1, %v2127_v49 }
  0x65   : > { %1948 = vmatprep.mubr.msk.bf16.mxu1 %vm357_vm1, %v2128_v50  ;;  %1982 = vmatprep.mubr.msk.bf16.mxu0 %vm357_vm1, %v2129_v51 }
  0x6c   : > { %1949 = vmatmul.mubr.msk.bf16.gmra.mrb[28].mxu1 %vm357_vm1, %v2130_v52  ;;  %1983 = vmatmul.mubr.msk.bf16.gmra.mrb[28].mxu0 %vm357_vm1, %v2131_v53 }
  0xe7   : > { %v1888_v54 = vpop.f32.mrb[0].mxu1 }
  0xe8   : > { %v444_v55 = vpop.f32.mrb[1].mxu1 }
  0xe9   : > { %v1889_v56 = vpop.f32.mrb[2].mxu1 }
  0xea   : > { %v447_v57 = vpop.f32.mrb[3].mxu1 }
  0xef   : > { %v1892_v58 = vpop.f32.mrb[4].mxu1 }
  0xf0   : > { %v460_v59 = vpop.f32.mrb[5].mxu1 }
  0xf1   : > { %v1893_v60 = vpop.f32.mrb[6].mxu1 }
  0xf2   : > { %v463_v61 = vpop.f32.mrb[7].mxu1 }
  0xf7   : > { %v1896_v62 = vpop.f32.mrb[8].mxu1 }
  0xf8   : > { %v476_v63 = vpop.f32.mrb[9].mxu1 }
  0xf9   : > { %v1897_v0 = vpop.f32.mrb[10].mxu1 }
  0xfa   : > { %v2442_v1 = vpop.f32.mrb[11].mxu1 }
  0xff   : > { %v2444_v2 = vpop.f32.mrb[12].mxu1 }
 0x100   : > { %v2446_v3 = vpop.f32.mrb[13].mxu1 }
 0x101   : > { %v2448_v4 = vpop.f32.mrb[14].mxu1 }
 0x102   : > { %v2450_v5 = vpop.f32.mrb[15].mxu1 }
 0x107   : > { %v1956_v6 = vpop.f32.mrb[0].mxu0 }
 0x108   : > { %v1988_v8 = vadd.f32 %v1956_v6, %v1888_v54  ;;  %v1077_v9 = vpop.f32.mrb[1].mxu0 }
 0x109   : > { %v1989_v10 = vadd.f32 %v1077_v9, %v444_v55  ;;  %v1957_v11 = vpop.f32.mrb[2].mxu0 }
 0x10a   : > { %v2458_v12 = vadd.f32 %v1988_v8, %v2455_v7  ;;  %v1990_v13 = vadd.f32 %v1957_v11, %v1889_v56  ;;  %v1080_v14 = vpop.f32.mrb[3].mxu0 }
 0x10b   : > { %v2461_v15 = vadd.f32 %v1989_v10, %v2455_v7  ;;  %v1991_v16 = vadd.f32 %v1080_v14, %v447_v57 }
 0x10c   : > { %v1800_v17 = vmul.f32 -1.442695, %v2458_v12  ;;  %v2465_v18 = vadd.f32 %v1990_v13, %v2455_v7 }
 0x10d   : > { %v1798_v19 = vmul.f32 -1.442695, %v2461_v15  ;;  %v2469_v20 = vadd.f32 %v1991_v16, %v2455_v7 }
 0x10e   : > { %2132 = vpow2.f32 %v1800_v17  ;;  %v1801_v21 = vmul.f32 -1.442695, %v2465_v18 }
 0x10f   : > { %2134 = vpow2.f32 %v1798_v19  ;;  %v1799_v22 = vmul.f32 -1.442695, %v2469_v20  ;;  %v1960_v23 = vpop.f32.mrb[4].mxu0 }
 0x110   : > { %2136 = vpow2.f32 %v1801_v21  ;;  %v1992_v24 = vadd.f32 %v1960_v23, %v1892_v58  ;;  %v1093_v25 = vpop.f32.mrb[5].mxu0 }
 0x111   : > { %2138 = vpow2.f32 %v1799_v22  ;;  %v1993_v26 = vadd.f32 %v1093_v25, %v460_v59  ;;  %v1961_v27 = vpop.f32.mrb[6].mxu0 }
 0x112   : > { %v2474_v28 = vadd.f32 %v1992_v24, %v2455_v7  ;;  %v1994_v29 = vadd.f32 %v1961_v27, %v1893_v60  ;;  %v1096_v30 = vpop.f32.mrb[7].mxu0 }
 0x113   : > { %v2477_v31 = vadd.f32 %v1993_v26, %v2455_v7  ;;  %v1995_v32 = vadd.f32 %v1096_v30, %v463_v61 }
 0x114   : > { %v1804_v33 = vmul.f32 -1.442695, %v2474_v28  ;;  %v2481_v34 = vadd.f32 %v1994_v29, %v2455_v7 }
 0x115   : > { %v1802_v35 = vmul.f32 -1.442695, %v2477_v31  ;;  %v2485_v36 = vadd.f32 %v1995_v32, %v2455_v7 }
 0x116   : > { %2140 = vpow2.f32 %v1804_v33  ;;  %v1805_v37 = vmul.f32 -1.442695, %v2481_v34 }
 0x117   : > { %2142 = vpow2.f32 %v1802_v35  ;;  %v1803_v38 = vmul.f32 -1.442695, %v2485_v36  ;;  %v1964_v39 = vpop.f32.mrb[8].mxu0 }
 0x118   : > { %v2133_v40 = vpop.eup %2132  ;;  %2144 = vpow2.f32 %v1805_v37  ;;  %v1996_v41 = vadd.f32 %v1964_v39, %v1896_v62  ;;  %v1109_v42 = vpop.f32.mrb[9].mxu0 }
 0x119   : > { %v2135_v43 = vpop.eup %2134  ;;  %v1373_v44 = vadd.f32 1.0, %v2133_v40  ;;  %2146 = vpow2.f32 %v1803_v38  ;;  %v1997_v45 = vadd.f32 %v1109_v42, %v476_v63  ;;  %v1965_v46 = vpop.f32.mrb[10].mxu0 }
 0x11a   : > { %v2137_v47 = vpop.eup %2136  ;;  %v1371_v48 = vadd.f32 1.0, %v2135_v43  ;;  %v2490_v49 = vadd.f32 %v1996_v41, %v2455_v7  ;;  %v1998_v50 = vadd.f32 %v1965_v46, %v1897_v0  ;;  %v1112_v51 = vpop.f32.mrb[11].mxu0 }
 0x11b   : > { %v2139_v52 = vpop.eup %2138  ;;  %2148 = vrcp.f32 %v1373_v44  ;;  %v1374_v53 = vadd.f32 1.0, %v2137_v47  ;;  %v2493_v54 = vadd.f32 %v1997_v45, %v2455_v7  ;;  %v1999_v55 = vadd.f32 %v1112_v51, %v2442_v1 }
 0x11c   : > { %2150 = vrcp.f32 %v1371_v48  ;;  %v1372_v56 = vadd.f32 1.0, %v2139_v52  ;;  %v1808_v57 = vmul.f32 -1.442695, %v2490_v49  ;;  %v2498_v58 = vadd.f32 %v1998_v50, %v2455_v7 }
 0x11d   : > { %2152 = vrcp.f32 %v1374_v53  ;;  %v1806_v59 = vmul.f32 -1.442695, %v2493_v54  ;;  %v2502_v60 = vadd.f32 %v1999_v55, %v2455_v7 }
 0x11e   : > { %2154 = vrcp.f32 %v1372_v56  ;;  %v1809_v61 = vmul.f32 -1.442695, %v2498_v58 }
 0x11f   : > { %2156 = vpow2.f32 %v1808_v57  ;;  %v1807_v62 = vmul.f32 -1.442695, %v2502_v60  ;;  %v1968_v63 = vpop.f32.mrb[12].mxu0 }
 0x120   : > { %v2141_v0 = vpop.eup %2140  ;;  %2158 = vpow2.f32 %v1806_v59  ;;  %v2000_v1 = vadd.f32 %v1968_v63, %v2444_v2  ;;  %v1125_v6 = vpop.f32.mrb[13].mxu0 }
 0x121   : > { %v2143_v8 = vpop.eup %2142  ;;  %v1377_v9 = vadd.f32 1.0, %v2141_v0  ;;  %2160 = vpow2.f32 %v1809_v61  ;;  %v2001_v10 = vadd.f32 %v1125_v6, %v2446_v3  ;;  %v1969_v11 = vpop.f32.mrb[14].mxu0 }
 0x122   : > { %v2145_v13 = vpop.eup %2144  ;;  %v1375_v14 = vadd.f32 1.0, %v2143_v8  ;;  %2162 = vpow2.f32 %v1807_v62  ;;  %v2510_v16 = vadd.f32 %v2000_v1, %v2455_v7  ;;  %v2002_v17 = vadd.f32 %v1969_v11, %v2448_v4  ;;  %v1128_v19 = vpop.f32.mrb[15].mxu0 }
 0x123   : > { %v2147_v21 = vpop.eup %2146  ;;  %2164 = vrcp.f32 %v1377_v9  ;;  %v1378_v2 = vadd.f32 1.0, %v2145_v13  ;;  %v2514_v22 = vadd.f32 %v2001_v10, %v2455_v7  ;;  %v2003_v23 = vadd.f32 %v1128_v19, %v2450_v5 }
 0x124   : > { %2166 = vrcp.f32 %v1375_v14  ;;  %v1376_v3 = vadd.f32 1.0, %v2147_v21  ;;  %v1812_v24 = vmul.f32 -1.442695, %v2510_v16  ;;  %v2519_v25 = vadd.f32 %v2002_v17, %v2455_v7 }
 0x125   : > { %v2149_v26 = vpop.eup %2148  ;;  %2168 = vrcp.f32 %v1378_v2  ;;  %v1810_v4 = vmul.f32 -1.442695, %v2514_v22  ;;  %v2528_v27 = vadd.f32 %v2003_v23, %v2455_v7 }
 0x126   : > { %v2151_v5 = vpop.eup %2150  ;;  %v1469_v29 = vmul.f32 %v2149_v26, %v2458_v12  ;;  %2170 = vrcp.f32 %v1376_v3  ;;  %v1813_v30 = vmul.f32 -1.442695, %v2519_v25 }
 0x127   : > { %v1938_v32 = vpop.f32.mrb[16].mxu1  ;;  %v2153_v33 = vpop.eup %2152  ;;  %v1467_v35 = vmul.f32 %v2151_v5, %v2461_v15  ;;  %2172 = vpow2.f32 %v1812_v24  ;;  %v1811_v37 = vmul.f32 -1.442695, %v2528_v27 }
 0x128   : > { %v1972_v38 = vpop.f32.mrb[16].mxu0  ;;  %v805_v39 = vpop.f32.mrb[17].mxu1  ;;  %1501 = vst [vmem:[%s2524_s4 + $0x10] sm:$0xff] %v1469_v29  ;;  %v1470_v41 = vmul.f32 %v2153_v33, %v2465_v18  ;;  %2174 = vpow2.f32 %v1810_v4 }
 0x129   : > { %v2155_v40 = vpop.eup %2154  ;;  %v2004_v12 = vadd.f32 %v1972_v38, %v1938_v32  ;;  %v1141_v42 = vpop.f32.mrb[17].mxu0  ;;  %1499 = vst [vmem:[%s2524_s4] sm:$0xff] %v1467_v35  ;;  %2176 = vpow2.f32 %v1813_v30 }
 0x12a   : > { %v1939_v43 = vpop.f32.mrb[18].mxu1  ;;  %v2157_v44 = vpop.eup %2156  ;;  %v1468_v45 = vmul.f32 %v2155_v40, %v2469_v20  ;;  %v2005_v15 = vadd.f32 %v1141_v42, %v805_v39  ;;  %1502 = vst [vmem:[%s2524_s4 + $0x18] sm:$0xff] %v1470_v41  ;;  %2178 = vpow2.f32 %v1811_v37 }
 0x12b   : > { %v1973_v46 = vpop.f32.mrb[18].mxu0  ;;  %v808_v47 = vpop.f32.mrb[19].mxu1  ;;  %v1381_v50 = vadd.f32 1.0, %v2157_v44  ;;  %v2540_v51 = vadd.f32 %v2004_v12, %v2455_v7 }
 0x12c   : > { %v2159_v48 = vpop.eup %2158  ;;  %v2006_v18 = vadd.f32 %v1973_v46, %v1939_v43  ;;  %v1144_v52 = vpop.f32.mrb[19].mxu0  ;;  %1500 = vst [vmem:[%s2524_s4 + $0x8] sm:$0xff] %v1468_v45  ;;  %v2544_v56 = vadd.f32 %v2005_v15, %v2455_v7 }
 0x12d   : > { %v2161_v53 = vpop.eup %2160  ;;  %v1379_v55 = vadd.f32 1.0, %v2159_v48  ;;  %v2007_v20 = vadd.f32 %v1144_v52, %v808_v47  ;;  %2180 = vrcp.f32 %v1381_v50  ;;  %v1816_v61 = vmul.f32 -1.442695, %v2540_v51 }
 0x12e   : > { %v2163_v57 = vpop.eup %2162  ;;  %v1382_v59 = vadd.f32 1.0, %v2161_v53  ;;  %v2548_v62 = vadd.f32 %v2006_v18, %v2455_v7  ;;  %v1814_v1 = vmul.f32 -1.442695, %v2544_v56 }
 0x12f   : > { %v2165_v63 = vpop.eup %2164  ;;  %2182 = vrcp.f32 %v1379_v55  ;;  %v1380_v0 = vadd.f32 1.0, %v2163_v57  ;;  %v2552_v6 = vadd.f32 %v2007_v20, %v2455_v7  ;;  %v1942_v11 = vpop.f32.mrb[20].mxu1 }
 0x130   : > { %v2167_v8 = vpop.eup %2166  ;;  %v1473_v9 = vmul.f32 %v2165_v63, %v2474_v28  ;;  %2184 = vrcp.f32 %v1382_v59  ;;  %v1817_v10 = vmul.f32 -1.442695, %v2548_v62  ;;  %v1976_v19 = vpop.f32.mrb[20].mxu0 }
 0x131   : > { %v2169_v13 = vpop.eup %2168  ;;  %v1471_v14 = vmul.f32 %v2167_v8, %v2477_v31  ;;  %2186 = vrcp.f32 %v1380_v0  ;;  %v1815_v17 = vmul.f32 -1.442695, %v2552_v6  ;;  %v821_v21 = vpop.f32.mrb[21].mxu1  ;;  %v2008_v28 = vadd.f32 %v1976_v19, %v1942_v11 }
 0x132   : > { %v2171_v2 = vpop.eup %2170  ;;  %1505 = vst [vmem:[%s2524_s4 + $0x30] sm:$0xff] %v1473_v9  ;;  %v1474_v23 = vmul.f32 %v2169_v13, %v2481_v34  ;;  %2188 = vpow2.f32 %v1816_v61  ;;  %v1157_v3 = vpop.f32.mrb[21].mxu0 }
 0x133   : > { %v1943_v24 = vpop.f32.mrb[22].mxu1  ;;  %v2173_v26 = vpop.eup %2172  ;;  %1503 = vst [vmem:[%s2524_s4 + $0x20] sm:$0xff] %v1471_v14  ;;  %v1472_v4 = vmul.f32 %v2171_v2, %v2485_v36  ;;  %2190 = vpow2.f32 %v1814_v1  ;;  %v2009_v31 = vadd.f32 %v1157_v3, %v821_v21  ;;  %v2564_v33 = vadd.f32 %v2008_v28, %v2455_v7 }
 0x134   : > { %v1977_v5 = vpop.f32.mrb[22].mxu0  ;;  %v824_v29 = vpop.f32.mrb[23].mxu1  ;;  %1506 = vst [vmem:[%s2524_s4 + $0x38] sm:$0xff] %v1474_v23  ;;  %v1385_v32 = vadd.f32 1.0, %v2173_v26  ;;  %2192 = vpow2.f32 %v1817_v10 }
 0x135   : > { %v2175_v30 = vpop.eup %2174  ;;  %v2010_v34 = vadd.f32 %v1977_v5, %v1943_v24  ;;  %v1160_v35 = vpop.f32.mrb[23].mxu0  ;;  %1504 = vst [vmem:[%s2524_s4 + $0x28] sm:$0xff] %v1472_v4  ;;  %2194 = vpow2.f32 %v1815_v17  ;;  %v2568_v39 = vadd.f32 %v2009_v31, %v2455_v7  ;;  %v1820_v12 = vmul.f32 -1.442695, %v2564_v33 }
 0x136   : > { %v2177_v37 = vpop.eup %2176  ;;  %v1383_v38 = vadd.f32 1.0, %v2175_v30  ;;  %v2011_v36 = vadd.f32 %v1160_v35, %v824_v29  ;;  %2196 = vrcp.f32 %v1385_v32 }
 0x137   : > { %v2179_v40 = vpop.eup %2178  ;;  %v1386_v41 = vadd.f32 1.0, %v2177_v37  ;;  %v2572_v42 = vadd.f32 %v2010_v34, %v2455_v7  ;;  %v1818_v44 = vmul.f32 -1.442695, %v2568_v39  ;;  %v1946_v47 = vpop.f32.mrb[24].mxu1 }
 0x138   : > { %2198 = vrcp.f32 %v1383_v38  ;;  %v1384_v43 = vadd.f32 1.0, %v2179_v40  ;;  %v2576_v45 = vadd.f32 %v2011_v36, %v2455_v7  ;;  %v2181_v15 = vpop.eup %2180  ;;  %v1980_v52 = vpop.f32.mrb[24].mxu0 }
 0x139   : > { %2200 = vrcp.f32 %v1386_v41  ;;  %v1821_v46 = vmul.f32 -1.442695, %v2572_v42  ;;  %v2183_v48 = vpop.eup %2182  ;;  %v1477_v50 = vmul.f32 %v2181_v15, %v2490_v49  ;;  %v837_v53 = vpop.f32.mrb[25].mxu1  ;;  %v2012_v57 = vadd.f32 %v1980_v52, %v1946_v47 }
 0x13a   : > { %2202 = vrcp.f32 %v1384_v43  ;;  %v1819_v18 = vmul.f32 -1.442695, %v2576_v45  ;;  %v2185_v55 = vpop.eup %2184  ;;  %v1475_v20 = vmul.f32 %v2183_v48, %v2493_v54  ;;  %v1173_v59 = vpop.f32.mrb[25].mxu0 }
 0x13b   : > { %2204 = vpow2.f32 %v1820_v12  ;;  %v1947_v61 = vpop.f32.mrb[26].mxu1  ;;  %v2187_v63 = vpop.eup %2186  ;;  %1509 = vst [vmem:[%s2524_s4 + $0x50] sm:$0xff] %v1477_v50  ;;  %v1478_v0 = vmul.f32 %v2185_v55, %v2498_v58  ;;  %v2013_v49 = vadd.f32 %v1173_v59, %v837_v53  ;;  %v2587_v54 = vadd.f32 %v2012_v57, %v2455_v7 }
 0x13c   : > { %2206 = vpow2.f32 %v1818_v44  ;;  %v1981_v1 = vpop.f32.mrb[26].mxu0  ;;  %v840_v8 = vpop.f32.mrb[27].mxu1  ;;  %1507 = vst [vmem:[%s2524_s4 + $0x40] sm:$0xff] %v1475_v20  ;;  %v1476_v10 = vmul.f32 %v2187_v63, %v2502_v60 }
 0x13d   : > { %v2189_v9 = vpop.eup %2188  ;;  %2208 = vpow2.f32 %v1821_v46  ;;  %v2014_v11 = vadd.f32 %v1981_v1, %v1947_v61  ;;  %v1176_v13 = vpop.f32.mrb[27].mxu0  ;;  %1510 = vst [vmem:[%s2524_s4 + $0x58] sm:$0xff] %v1478_v0  ;;  %v2591_v58 = vadd.f32 %v2013_v49, %v2455_v7  ;;  %v1824_v3 = vmul.f32 -1.442695, %v2587_v54 }
 0x13e   : > { %v2191_v14 = vpop.eup %2190  ;;  %v1389_v17 = vadd.f32 1.0, %v2189_v9  ;;  %2210 = vpow2.f32 %v1819_v18  ;;  %v2015_v19 = vadd.f32 %v1176_v13, %v840_v8  ;;  %1508 = vst [vmem:[%s2524_s4 + $0x48] sm:$0xff] %v1476_v10 }
 0x13f   : > { %v2193_v21 = vpop.eup %2192  ;;  %v1387_v2 = vadd.f32 1.0, %v2191_v14  ;;  %v2595_v23 = vadd.f32 %v2014_v11, %v2455_v7  ;;  %v1822_v31 = vmul.f32 -1.442695, %v2591_v58  ;;  %v1950_v5 = vpop.f32.mrb[28].mxu1 }
 0x140   : > { %v2195_v60 = vpop.eup %2194  ;;  %2212 = vrcp.f32 %v1389_v17  ;;  %v1390_v28 = vadd.f32 1.0, %v2193_v21  ;;  %v2599_v24 = vadd.f32 %v2015_v19, %v2455_v7  ;;  %v1984_v34 = vpop.f32.mrb[28].mxu0 }
 0x141   : > { %v2197_v26 = vpop.eup %2196  ;;  %2214 = vrcp.f32 %v1387_v2  ;;  %v1388_v4 = vadd.f32 1.0, %v2195_v60  ;;  %v1825_v32 = vmul.f32 -1.442695, %v2595_v23  ;;  %v853_v35 = vpop.f32.mrb[29].mxu1  ;;  %v2016_v40 = vadd.f32 %v1984_v34, %v1950_v5 }
 0x142   : > { %v2199_v29 = vpop.eup %2198  ;;  %v1481_v30 = vmul.f32 %v2197_v26, %v2510_v16  ;;  %2216 = vrcp.f32 %v1390_v28  ;;  %v1823_v36 = vmul.f32 -1.442695, %v2599_v24  ;;  %v1189_v41 = vpop.f32.mrb[29].mxu0 }
 0x143   : > { %v2201_v37 = vpop.eup %2200  ;;  %v1479_v38 = vmul.f32 %v2199_v29, %v2514_v22  ;;  %2218 = vrcp.f32 %v1388_v4  ;;  %v1951_v12 = vpop.f32.mrb[30].mxu1  ;;  %v2017_v44 = vadd.f32 %v1189_v41, %v853_v35  ;;  %v2611_v48 = vadd.f32 %v2016_v40, %v2455_v7 }
 0x144   : > { %v2203_v43 = vpop.eup %2202  ;;  %1513 = vst [vmem:[%s2524_s4 + $0x70] sm:$0xff] %v1481_v30  ;;  %v1482_v16 = vmul.f32 %v2201_v37, %v2519_v25  ;;  %2220 = vpow2.f32 %v1824_v3  ;;  %v1985_v15 = vpop.f32.mrb[30].mxu0 }
 0x145   : > { %v856_v46 = vpop.f32.mrb[31].mxu1  ;;  %v2205_v47 = vpop.eup %2204  ;;  %1511 = vst [vmem:[%s2524_s4 + $0x60] sm:$0xff] %v1479_v38  ;;  %v1480_v22 = vmul.f32 %v2203_v43, %v2528_v27  ;;  %2222 = vpow2.f32 %v1822_v31  ;;  %v2018_v50 = vadd.f32 %v1985_v15, %v1951_v12  ;;  %v2615_v25 = vadd.f32 %v2017_v44, %v2455_v7 }
 0x146   : > { %v1192_v18 = vpop.f32.mrb[31].mxu0  ;;  %v2207_v52 = vpop.eup %2206  ;;  %1514 = vst [vmem:[%s2524_s4 + $0x78] sm:$0xff] %v1482_v16  ;;  %v1393_v53 = vadd.f32 1.0, %v2205_v47  ;;  %2224 = vpow2.f32 %v1825_v32  ;;  %v1828_v63 = vmul.f32 -1.442695, %v2611_v48 }
 0x147   : > { %v2019_v55 = vadd.f32 %v1192_v18, %v856_v46  ;;  %v2209_v20 = vpop.eup %2208  ;;  %1512 = vst [vmem:[%s2524_s4 + $0x68] sm:$0xff] %v1480_v22  ;;  %v1391_v57 = vadd.f32 1.0, %v2207_v52  ;;  %2226 = vpow2.f32 %v1823_v36  ;;  %v2619_v27 = vadd.f32 %v2018_v50, %v2455_v7 }
 0x148   : > { %v2211_v59 = vpop.eup %2210  ;;  %2228 = vrcp.f32 %v1393_v53  ;;  %v1394_v61 = vadd.f32 1.0, %v2209_v20  ;;  %v1826_v1 = vmul.f32 -1.442695, %v2615_v25 }
 0x149   : > { %v2623_v0 = vadd.f32 %v2019_v55, %v2455_v7  ;;  %2230 = vrcp.f32 %v1391_v57  ;;  %v1392_v49 = vadd.f32 1.0, %v2211_v59  ;;  %v1829_v9 = vmul.f32 -1.442695, %v2619_v27 }
 0x14a   : > { %v2213_v8 = vpop.eup %2212  ;;  %2232 = vrcp.f32 %v1394_v61 }
 0x14b   : > { %v2215_v10 = vpop.eup %2214  ;;  %v1485_v11 = vmul.f32 %v2213_v8, %v2540_v51  ;;  %2234 = vrcp.f32 %v1392_v49  ;;  %v1827_v13 = vmul.f32 -1.442695, %v2623_v0 }
 0x14c   : > { %v2217_v14 = vpop.eup %2216  ;;  %v1483_v7 = vmul.f32 %v2215_v10, %v2544_v56  ;;  %2236 = vpow2.f32 %v1828_v63 }
 0x14d   : > { %v2219_v17 = vpop.eup %2218  ;;  %1517 = vst [vmem:[%s2524_s4 + $0x90] sm:$0xff] %v1485_v11  ;;  %v1486_v19 = vmul.f32 %v2217_v14, %v2548_v62  ;;  %2238 = vpow2.f32 %v1826_v1 }
 0x14e   : > { %v2221_v21 = vpop.eup %2220  ;;  %1515 = vst [vmem:[%s2524_s4 + $0x80] sm:$0xff] %v1483_v7  ;;  %v1484_v2 = vmul.f32 %v2219_v17, %v2552_v6  ;;  %2240 = vpow2.f32 %v1829_v9 }
 0x14f   : > { %v2223_v60 = vpop.eup %2222  ;;  %1518 = vst [vmem:[%s2524_s4 + $0x98] sm:$0xff] %v1486_v19  ;;  %v1397_v51 = vadd.f32 1.0, %v2221_v21  ;;  %2242 = vpow2.f32 %v1827_v13 }
 0x150   : > { %v2225_v28 = vpop.eup %2224  ;;  %1516 = vst [vmem:[%s2524_s4 + $0x88] sm:$0xff] %v1484_v2  ;;  %v1395_v3 = vadd.f32 1.0, %v2223_v60 }
 0x151   : > { %v2227_v56 = vpop.eup %2226  ;;  %2244 = vrcp.f32 %v1397_v51  ;;  %v1398_v26 = vadd.f32 1.0, %v2225_v28 }
 0x152   : > { %v2229_v4 = vpop.eup %2228  ;;  %2246 = vrcp.f32 %v1395_v3  ;;  %v1396_v62 = vadd.f32 1.0, %v2227_v56 }
 0x153   : > { %v2231_v31 = vpop.eup %2230  ;;  %v1489_v6 = vmul.f32 %v2229_v4, %v2564_v33  ;;  %2248 = vrcp.f32 %v1398_v26 }
 0x154   : > { %v2233_v5 = vpop.eup %2232  ;;  %v1487_v29 = vmul.f32 %v2231_v31, %v2568_v39  ;;  %2250 = vrcp.f32 %v1396_v62 }
 0x155   : > { %v2235_v30 = vpop.eup %2234  ;;  %1521 = vst [vmem:[%s2524_s4 + $0xb0] sm:$0xff] %v1489_v6  ;;  %v1490_v32 = vmul.f32 %v2233_v5, %v2572_v42 }
 0x156   : > { %v2237_v34 = vpop.eup %2236  ;;  %1519 = vst [vmem:[%s2524_s4 + $0xa0] sm:$0xff] %v1487_v29  ;;  %v1488_v35 = vmul.f32 %v2235_v30, %v2576_v45 }
 0x157   : > { %v2239_v37 = vpop.eup %2238  ;;  %1522 = vst [vmem:[%s2524_s4 + $0xb8] sm:$0xff] %v1490_v32  ;;  %v1401_v38 = vadd.f32 1.0, %v2237_v34 }
 0x158   : > { %v2241_v36 = vpop.eup %2240  ;;  %1520 = vst [vmem:[%s2524_s4 + $0xa8] sm:$0xff] %v1488_v35  ;;  %v1399_v33 = vadd.f32 1.0, %v2239_v37 }
 0x159   : > { %v2243_v40 = vpop.eup %2242  ;;  %2252 = vrcp.f32 %v1401_v38  ;;  %v1402_v39 = vadd.f32 1.0, %v2241_v36 }
 0x15a   : > { %2254 = vrcp.f32 %v1399_v33  ;;  %v1400_v41 = vadd.f32 1.0, %v2243_v40 }
 0x15b   : > { %v2245_v42 = vpop.eup %2244  ;;  %2256 = vrcp.f32 %v1402_v39 }
 0x15c   : > { %v2247_v12 = vpop.eup %2246  ;;  %v1493_v45 = vmul.f32 %v2245_v42, %v2587_v54  ;;  %2258 = vrcp.f32 %v1400_v41 }
 0x15d   : > { %v2249_v43 = vpop.eup %2248  ;;  %v1491_v16 = vmul.f32 %v2247_v12, %v2591_v58 }
 0x15e   : > { %v2251_v44 = vpop.eup %2250  ;;  %1525 = vst [vmem:[%s2524_s4 + $0xd0] sm:$0xff] %v1493_v45  ;;  %v1494_v15 = vmul.f32 %v2249_v43, %v2595_v23 }
 0x15f   : > { %1523 = vst [vmem:[%s2524_s4 + $0xc0] sm:$0xff] %v1491_v16  ;;  %v1492_v46 = vmul.f32 %v2251_v44, %v2599_v24 }
 0x160   : > { %1526 = vst [vmem:[%s2524_s4 + $0xd8] sm:$0xff] %v1494_v15 }
 0x161   : > { %1524 = vst [vmem:[%s2524_s4 + $0xc8] sm:$0xff] %v1492_v46 }
 0x163   : > { %v2253_v47 = vpop.eup %2252 }
 0x164   : > { %v2255_v22 = vpop.eup %2254  ;;  %v1497_v54 = vmul.f32 %v2253_v47, %v2611_v48 }
 0x165   : > { %v2257_v50 = vpop.eup %2256  ;;  %v1495_v18 = vmul.f32 %v2255_v22, %v2615_v25 }
 0x166   : > { %v2259_v58 = vpop.eup %2258  ;;  %1529 = vst [vmem:[%s2524_s4 + $0xf0] sm:$0xff] %v1497_v54  ;;  %v1498_v52 = vmul.f32 %v2257_v50, %v2619_v27 }
 0x167   : > { %1527 = vst [vmem:[%s2524_s4 + $0xe0] sm:$0xff] %v1495_v18  ;;  %v1496_v23 = vmul.f32 %v2259_v58, %v2623_v0 }
 0x168   : > { %1530 = vst [vmem:[%s2524_s4 + $0xf8] sm:$0xff] %v1498_v52 }
 0x169   : > { %1528 = vst [vmem:[%s2524_s4 + $0xe8] sm:$0xff] %v1496_v23 }
 0x16a PF: > { %s13_s14 = sadd.s32 1, %s2282_s14   ;;  %s2673_s12 = smov %s2278_s13 }
 0x16b   : > { %p10_p5 = scmp.ge.s32.totalorder %s13_s14, 4   ;;  %s2674_s13 = smov %s2676_s15 }
 0x16d   :  { %12 = sbr.rel (!%p10_p5) target bundleno = 2 (0x2), region = 67 }

</bundles_post_ra>
